<compile_context>
chip_gen: v6e
topology: v6e:2x2x1
jax: 0.10.0
libtpu: 0.0.40
codegen_flags: <defaults>
</compile_context>

<pallas_src>
import functools

import jax
import jax.numpy as jnp
from jax import lax
from jax.experimental import pallas as pl
from jax.experimental.pallas import tpu as pltpu

_LANES = 128
_NEG_BIG = -1e30          # sentinel logit: sigmoid -> 0, softplus -> 0, bce -> 0
_SMOOTH = 1.0
_TILE_ROWS_CAP = 8192     # 8192*128*4 B = 4 MiB / input tile; x2 inputs x2 bufs = 16 MiB
_CHUNK_ROWS = 256         # rows processed per fori_loop iteration inside a tile
_VMEM_LIMIT = 32 * 1024 * 1024


def _bce_dice_sums_kernel(x_ref, m_ref, o_ref, *, tr, ch, sps, nblocks,
                          rows_valid, tail_partial, has_dups):
    """Accumulates lane-dense partial sums into o_ref (f32[1, 24, 128]).

    Output rows  0: 8 -> partials of sigmoid(x) * m      (Dice intersection)
                 8:16 -> partials of sigmoid(x) + m      (Dice union)
                16:24 -> partials of BCE-with-logits(x, m)
    o_ref stays resident across the (arbitrary) reduction axis.
    """
    c = pl.program_id(0)          # megacore split ("parallel")
    i = pl.program_id(1)          # reduction steps inside the split
    blk = c * sps + i             # logical block index

    @pl.when(i == 0)
    def _init():
        o_ref[...] = jnp.zeros_like(o_ref)

    n_chunks = tr // ch

    def accumulate(masked):
        def body(k, carry):
            a_inter, a_union, a_bce = carry
            r0 = pl.multiple_of(k * ch, ch)
            x = x_ref[pl.ds(r0, ch), :].astype(jnp.float32)
            m = m_ref[pl.ds(r0, ch), :].astype(jnp.float32)
            if masked:
                # Replace out-of-range (never-DMA'd / garbage) rows with the
                # sentinel BEFORE any exp/log so they contribute exactly 0.
                rid = (blk * tr + r0
                       + lax.broadcasted_iota(jnp.int32, (ch, _LANES), 0))
                valid = rid < rows_valid
                x = jnp.where(valid, x, _NEG_BIG)
                m = jnp.where(valid, m, 0.0)

            # Stable BCE-with-logits / sigmoid with 1 exp + 1 log + 1 recip:
            #   e = exp(-|x|);  softplus(x) = max(x,0) + log(1+e)
            #   sigmoid(x) = where(x>=0, 1, e) / (1+e)
            #   bce(x, m)  = softplus(x) - m*x
            e = jnp.exp(-jnp.abs(x))
            one_pe = 1.0 + e
            sp = jnp.maximum(x, 0.0) + jnp.log(one_pe)
            p = jnp.where(x >= 0.0, 1.0, e) * pl.reciprocal(one_pe)
            bce = sp - m * x

            fold = lambda v: v.reshape(ch // 8, 8, _LANES).sum(axis=0)
            return (a_inter + fold(p * m),
                    a_union + fold(p + m),
                    a_bce + fold(bce))

        z = jnp.zeros((8, _LANES), jnp.float32)
        a_inter, a_union, a_bce = lax.fori_loop(0, n_chunks, body, (z, z, z))
        # One read-modify-write per accumulator per tile.
        o_ref[0, 0:8, :] += a_inter
        o_ref[0, 8:16, :] += a_union
        o_ref[0, 16:24, :] += a_bce

    if tail_partial:
        # Only the single partial tail block pays for the masking VALU work.
        @pl.when(blk < nblocks - 1)
        def _full():
            accumulate(masked=False)

        @pl.when(blk == nblocks - 1)
        def _tail():
            accumulate(masked=True)
        # blk > nblocks-1 (clamped duplicate steps): skipped entirely.
    elif has_dups:
        @pl.when(blk < nblocks)
        def _full():
            accumulate(masked=False)
    else:
        accumulate(masked=False)


def _num_tensorcores():
    """2 for chips where a 'parallel' grid axis spans two TensorCores."""
    try:
        kind = jax.devices()[0].device_kind.lower()
    except Exception:
        return 1
    if ("v7" in kind) or ("tpu7" in kind) or ("v4" in kind) or ("v5p" in kind):
        return 2
    return 1  # v5e / v6e: single TensorCore


def _plan(rows):
    """Static tiling plan -> (tile_rows, chunk_rows, steps_per_split, splits)."""
    tr = min(_TILE_ROWS_CAP, (rows // 8) * 8)     # multiple of 8, <= rows
    ch = _CHUNK_ROWS
    while tr % ch:                                # largest chunk dividing tr
        ch //= 2
    nblocks = -(-rows // tr)
    splits = _num_tensorcores() if nblocks >= 2 else 1
    sps = -(-nblocks // splits)
    return tr, ch, sps, splits


def _bce_dice_sums(pred, mask):
    """Returns (inter, union, sbce) global f32 sums over all elements."""
    n = pred.size
    x = pred.reshape(-1)
    m = mask.reshape(-1)

    rows = n // _LANES
    inter = jnp.float32(0.0)
    union = jnp.float32(0.0)
    sbce = jnp.float32(0.0)
    used = 0

    if rows >= 8:
        used = rows * _LANES
        # When n % 128 == 0 this slice+reshape is a zero-copy bitcast (the
        # common case for [B,1,H,W] image tensors).
        x2 = x[:used].reshape(rows, _LANES)
        m2 = m[:used].reshape(rows, _LANES)

        tr, ch, sps, splits = _plan(rows)
        nblocks = -(-rows // tr)
        tail_partial = (rows % tr) != 0
        has_dups = splits * sps > nblocks

        def in_map(c, i):  # clamp so the DMA never indexes past the last block
            return (jnp.minimum(c * sps + i, nblocks - 1), 0)

        kernel = functools.partial(
            _bce_dice_sums_kernel, tr=tr, ch=ch, sps=sps, nblocks=nblocks,
            rows_valid=rows, tail_partial=tail_partial, has_dups=has_dups)

        cost = pl.CostEstimate(
            flops=14 * used,
            transcendentals=3 * used,
            bytes_accessed=used * (x2.dtype.itemsize + m2.dtype.itemsize)
                           + splits * 24 * _LANES * 4)

        partials = pl.pallas_call(
            kernel,
            out_shape=jax.ShapeDtypeStruct((splits, 24, _LANES), jnp.float32),
            grid=(splits, sps),
            in_specs=[pl.BlockSpec((tr, _LANES), in_map),
                      pl.BlockSpec((tr, _LANES), in_map)],
            out_specs=pl.BlockSpec((1, 24, _LANES), lambda c, i: (c, 0, 0)),
            compiler_params=pltpu.CompilerParams(
                dimension_semantics=("parallel", "arbitrary"),
                vmem_limit_bytes=_VMEM_LIMIT),
            cost_estimate=cost,
        )(x2, m2)

        sums = partials.reshape(splits, 3, 8, _LANES).sum(axis=(0, 2, 3))
        inter, union, sbce = sums[0], sums[1], sums[2]

    if used < n:
        # Residual: the n % 128 lane tail (or the whole tensor when it is tiny,
        # rows < 8). At most 127 (or < 1024) elements -> trivial jnp epilogue,
        # no jnp.pad full-copy of the inputs.
        xt = x[used:].astype(jnp.float32)
        mt = m[used:].astype(jnp.float32)
        e = jnp.exp(-jnp.abs(xt))
        sp = jnp.maximum(xt, 0.0) + jnp.log1p(e)
        p = jnp.where(xt >= 0.0, 1.0, e) / (1.0 + e)
        inter = inter + jnp.sum(p * mt)
        union = union + jnp.sum(p) + jnp.sum(mt)
        sbce = sbce + jnp.sum(sp - mt * xt)

    return inter, union, sbce


@jax.jit
def bce_dice_iou_loss(pred, mask, pred_iou):
    """BCE_Diceloss_IoULoss.forward: BCE(sigmoid(pred), mask) mean + DiceLoss.

    pred, mask: [B, 1, H, W] (pred holds logits). pred_iou: [B, 1], accepted
    but unused — the reference forward never invokes MaskIoULoss / weight /
    iou_scale.
    """
    assert pred.shape == mask.shape, "pred and mask should have the same shape."
    del pred_iou  # reference forward ignores it
    inter, union, sbce = _bce_dice_sums(pred, mask)
    numel = jnp.float32(pred.size)
    bce_loss = sbce / numel
    dice_loss = 1.0 - (2.0 * inter + _SMOOTH) / (union + _SMOOTH)
    return bce_loss + dice_loss


def _reference_loss(pred, mask):
    """Pure-JAX reference of the PyTorch forward (BCE mean + Dice)."""
    x = pred.astype(jnp.float32).reshape(-1)
    m = mask.astype(jnp.float32).reshape(-1)
    p = jax.nn.sigmoid(x)
    bce = jnp.mean(jax.nn.softplus(x) - m * x)
    inter = jnp.sum(p * m)
    uni = jnp.sum(p) + jnp.sum(m)
    dice = 1.0 - (2.0 * inter + 1.0) / (uni + 1.0)
    return bce + dice


if __name__ == "__main__":
    key = jax.random.PRNGKey(0)
    k1, k2, k3, k4, k5, k6, k7 = jax.random.split(key, 7)

    # Small [B, 1, H, W] case (single-block kernel path).
    pred = jax.random.normal(k1, (2, 1, 64, 64), jnp.float32) * 3.0
    mask = (jax.random.uniform(k2, (2, 1, 64, 64)) > 0.5).astype(jnp.float32)
    pred_iou = jax.random.uniform(k3, (2, 1), jnp.float32)
    loss = jax.block_until_ready(bce_dice_iou_loss(pred, mask, pred_iou))
    ref = _reference_loss(pred, mask)
    assert jnp.isfinite(loss), "loss is not finite"
    assert jnp.allclose(loss, ref, rtol=1e-4, atol=1e-4), (loss, ref)

    # Larger case: multi-step pipelined grid, partial (masked) tail block and
    # the megacore split on 2-TensorCore parts.
    pred2 = jax.random.normal(k4, (3, 1, 640, 768), jnp.float32) * 3.0
    mask2 = (jax.random.uniform(k5, (3, 1, 640, 768)) > 0.5).astype(jnp.float32)
    loss2 = jax.block_until_ready(
        bce_dice_iou_loss(pred2, mask2, jnp.zeros((3, 1), jnp.float32)))
    ref2 = _reference_loss(pred2, mask2)
    assert jnp.isfinite(loss2), "loss2 is not finite"
    assert jnp.allclose(loss2, ref2, rtol=1e-3, atol=1e-4), (loss2, ref2)

    # Odd-sized case: numel % 128 != 0 exercises the residual (no-pad) path.
    pred3 = jax.random.normal(k6, (2, 1, 33, 35), jnp.float32)
    mask3 = (jax.random.uniform(k7, (2, 1, 33, 35)) > 0.5).astype(jnp.float32)
    loss3 = jax.block_until_ready(
        bce_dice_iou_loss(pred3, mask3, jnp.zeros((2, 1), jnp.float32)))
    ref3 = _reference_loss(pred3, mask3)
    assert jnp.isfinite(loss3), "loss3 is not finite"
    assert jnp.allclose(loss3, ref3, rtol=1e-4, atol=1e-4), (loss3, ref3)

    print("KERNEL_OK")
</pallas_src>

<mosaic_0001>
module attributes {stable_mosaic.version = 11 : i64} {
  func.func @_bce_dice_sums_kernel(%arg0: i32, %arg1: i32, %arg2: memref<64x128xf32, #tpu.memory_space<vmem>>, %arg3: memref<64x128xf32, #tpu.memory_space<vmem>>, %arg4: memref<1x24x128xf32, #tpu.memory_space<vmem>>) attributes {dimension_semantics = [#tpu.dimension_semantics<parallel>, #tpu.dimension_semantics<arbitrary>], iteration_bounds = array<i64: 1, 1>, scalar_prefetch = 0 : i64, scratch_operands = 0 : i64, tpu.core_type = #tpu.core_type<tc>, window_params = [{transform_indices = @transform_0, window_bounds = array<i64: 64, 128>}, {transform_indices = @transform_1, window_bounds = array<i64: 64, 128>}, {transform_indices = @transform_2, window_bounds = array<i64: 1, 24, 128>}]} {
    %c0_i32 = arith.constant 0 : i32
    %0 = arith.cmpi eq, %arg1, %c0_i32 : i32
    %1 = arith.extui %0 : i1 to i32
    %c0_i32_0 = arith.constant 0 : i32
    %2 = arith.cmpi ne, %1, %c0_i32_0 : i32
    scf.if %2 {
      %cst_27 = arith.constant 0.000000e+00 : f32
      %57 = vector.broadcast %cst_27 : f32 to vector<1x24x128xf32>
      %c0_28 = arith.constant 0 : index
      %c0_29 = arith.constant 0 : index
      %c0_30 = arith.constant 0 : index
      %58 = vector.load %arg4[%c0_28, %c0_29, %c0_30] : memref<1x24x128xf32, #tpu.memory_space<vmem>>, vector<1x24x128xf32>
      tpu.vector_store %arg4[%c0_28, %c0_29, %c0_30], %57 {strides = array<i32>} : memref<1x24x128xf32, #tpu.memory_space<vmem>>, vector<1x24x128xf32>,
    } else {
    }
    %cst = arith.constant 0.000000e+00 : f32
    %3 = vector.broadcast %cst : f32 to vector<8x128xf32>
    %c0_i32_1 = arith.constant 0 : i32
    %c64_i32 = arith.constant 64 : i32
    %4 = arith.muli %c0_i32_1, %c64_i32 : i32
    %5 = tpu.assume_multiple %4, 64 : i32
    %6 = arith.index_cast %5 : i32 to index
    %c0 = arith.constant 0 : index
    %7 = vector.load %arg2[%6, %c0] : memref<64x128xf32, #tpu.memory_space<vmem>>, vector<64x128xf32>
    %8 = arith.index_cast %5 : i32 to index
    %c0_2 = arith.constant 0 : index
    %9 = vector.load %arg3[%8, %c0_2] : memref<64x128xf32, #tpu.memory_space<vmem>>, vector<64x128xf32>
    %10 = math.absf %7 : vector<64x128xf32>
    %cst_3 = arith.constant 0.000000e+00 : f32
    %11 = vector.broadcast %cst_3 : f32 to vector<64x128xf32>
    %12 = arith.subf %11, %10 : vector<64x128xf32>
    %13 = math.exp %12 : vector<64x128xf32>
    %cst_4 = arith.constant 1.000000e+00 : f32
    %14 = vector.broadcast %cst_4 : f32 to vector<64x128xf32>
    %15 = arith.addf %14, %13 : vector<64x128xf32>
    %cst_5 = arith.constant 0.000000e+00 : f32
    %16 = vector.broadcast %cst_5 : f32 to vector<64x128xf32>
    %17 = arith.maximumf %7, %16 : vector<64x128xf32>
    %18 = math.log %15 : vector<64x128xf32>
    %19 = arith.addf %17, %18 : vector<64x128xf32>
    %cst_6 = arith.constant 0.000000e+00 : f32
    %20 = vector.broadcast %cst_6 : f32 to vector<64x128xf32>
    %21 = arith.cmpf oge, %7, %20 : vector<64x128xf32>
    %cst_7 = arith.constant 1.000000e+00 : f32
    %22 = vector.broadcast %cst_7 : f32 to vector<64x128xf32>
    %23 = arith.select %21, %22, %13 : vector<64x128xi1>, vector<64x128xf32>
    %24 = tpu.reciprocal %15 : vector<64x128xf32> -> vector<64x128xf32>
    %25 = arith.mulf %23, %24 : vector<64x128xf32>
    %26 = arith.mulf %9, %7 : vector<64x128xf32>
    %27 = arith.subf %19, %26 : vector<64x128xf32>
    %28 = arith.mulf %25, %9 : vector<64x128xf32>
    %29 = vector.shape_cast %28 : vector<64x128xf32> to vector<8x8x128xf32>
    %cst_8 = arith.constant dense<0.000000e+00> : vector<8x128xf32>
    %30 = vector.multi_reduction <add>, %29, %cst_8 [0] : vector<8x8x128xf32> to vector<8x128xf32>
    %31 = arith.addf %3, %30 : vector<8x128xf32>
    %32 = arith.addf %25, %9 : vector<64x128xf32>
    %33 = vector.shape_cast %32 : vector<64x128xf32> to vector<8x8x128xf32>
    %cst_9 = arith.constant dense<0.000000e+00> : vector<8x128xf32>
    %34 = vector.multi_reduction <add>, %33, %cst_9 [0] : vector<8x8x128xf32> to vector<8x128xf32>
    %35 = arith.addf %3, %34 : vector<8x128xf32>
    %36 = vector.shape_cast %27 : vector<64x128xf32> to vector<8x8x128xf32>
    %cst_10 = arith.constant dense<0.000000e+00> : vector<8x128xf32>
    %37 = vector.multi_reduction <add>, %36, %cst_10 [0] : vector<8x8x128xf32> to vector<8x128xf32>
    %38 = arith.addf %3, %37 : vector<8x128xf32>
    %c1_i32 = arith.constant 1 : i32
    %c0_11 = arith.constant 0 : index
    %c0_12 = arith.constant 0 : index
    %c0_13 = arith.constant 0 : index
    %39 = vector.load %arg4[%c0_11, %c0_12, %c0_13] : memref<1x24x128xf32, #tpu.memory_space<vmem>>, vector<1x8x128xf32>
    %40 = vector.shape_cast %39 : vector<1x8x128xf32> to vector<8x128xf32>
    %41 = arith.addf %40, %31 : vector<8x128xf32>
    %c0_14 = arith.constant 0 : index
    %c0_15 = arith.constant 0 : index
    %c0_16 = arith.constant 0 : index
    %42 = vector.load %arg4[%c0_14, %c0_15, %c0_16] : memref<1x24x128xf32, #tpu.memory_space<vmem>>, vector<1x8x128xf32>
    %43 = vector.shape_cast %42 : vector<1x8x128xf32> to vector<8x128xf32>
    %44 = vector.shape_cast %41 : vector<8x128xf32> to vector<1x8x128xf32>
    tpu.vector_store %arg4[%c0_14, %c0_15, %c0_16], %44 {strides = array<i32>} : memref<1x24x128xf32, #tpu.memory_space<vmem>>, vector<1x8x128xf32>,
    %c0_17 = arith.constant 0 : index
    %c8 = arith.constant 8 : index
    %c0_18 = arith.constant 0 : index
    %45 = vector.load %arg4[%c0_17, %c8, %c0_18] : memref<1x24x128xf32, #tpu.memory_space<vmem>>, vector<1x8x128xf32>
    %46 = vector.shape_cast %45 : vector<1x8x128xf32> to vector<8x128xf32>
    %47 = arith.addf %46, %35 : vector<8x128xf32>
    %c0_19 = arith.constant 0 : index
    %c8_20 = arith.constant 8 : index
    %c0_21 = arith.constant 0 : index
    %48 = vector.load %arg4[%c0_19, %c8_20, %c0_21] : memref<1x24x128xf32, #tpu.memory_space<vmem>>, vector<1x8x128xf32>
    %49 = vector.shape_cast %48 : vector<1x8x128xf32> to vector<8x128xf32>
    %50 = vector.shape_cast %47 : vector<8x128xf32> to vector<1x8x128xf32>
    tpu.vector_store %arg4[%c0_19, %c8_20, %c0_21], %50 {strides = array<i32>} : memref<1x24x128xf32, #tpu.memory_space<vmem>>, vector<1x8x128xf32>,
    %c0_22 = arith.constant 0 : index
    %c16 = arith.constant 16 : index
    %c0_23 = arith.constant 0 : index
    %51 = vector.load %arg4[%c0_22, %c16, %c0_23] : memref<1x24x128xf32, #tpu.memory_space<vmem>>, vector<1x8x128xf32>
    %52 = vector.shape_cast %51 : vector<1x8x128xf32> to vector<8x128xf32>
    %53 = arith.addf %52, %38 : vector<8x128xf32>
    %c0_24 = arith.constant 0 : index
    %c16_25 = arith.constant 16 : index
    %c0_26 = arith.constant 0 : index
    %54 = vector.load %arg4[%c0_24, %c16_25, %c0_26] : memref<1x24x128xf32, #tpu.memory_space<vmem>>, vector<1x8x128xf32>
    %55 = vector.shape_cast %54 : vector<1x8x128xf32> to vector<8x128xf32>
    %56 = vector.shape_cast %53 : vector<8x128xf32> to vector<1x8x128xf32>
    tpu.vector_store %arg4[%c0_24, %c16_25, %c0_26], %56 {strides = array<i32>} : memref<1x24x128xf32, #tpu.memory_space<vmem>>, vector<1x8x128xf32>,
    return
  }
  func.func @transform_0(%arg0: i32, %arg1: i32) -> (i32, i32) {
    %c1_i32 = arith.constant 1 : i32
    %0 = arith.muli %arg0, %c1_i32 : i32
    %1 = arith.addi %0, %arg1 : i32
    %c0_i32 = arith.constant 0 : i32
    %2 = arith.minsi %1, %c0_i32 : i32
    %c0_i32_0 = arith.constant 0 : i32
    %c0_i32_1 = arith.constant 0 : i32
    return %2, %c0_i32_0 : i32, i32
  }
  func.func @transform_1(%arg0: i32, %arg1: i32) -> (i32, i32) {
    %c1_i32 = arith.constant 1 : i32
    %0 = arith.muli %arg0, %c1_i32 : i32
    %1 = arith.addi %0, %arg1 : i32
    %c0_i32 = arith.constant 0 : i32
    %2 = arith.minsi %1, %c0_i32 : i32
    %c0_i32_0 = arith.constant 0 : i32
    %c0_i32_1 = arith.constant 0 : i32
    return %2, %c0_i32_0 : i32, i32
  }
  func.func @transform_2(%arg0: i32, %arg1: i32) -> (i32, i32, i32) {
    %c0_i32 = arith.constant 0 : i32
    %c0_i32_0 = arith.constant 0 : i32
    %c0_i32_1 = arith.constant 0 : i32
    return %arg0, %c0_i32, %c0_i32_0 : i32, i32, i32
  }
}

</mosaic_0001>

<bundles_post_ra>
// kernel: bce_dice_iou_loss.1
= control target key start
LH: loop header
LB: loop body
LE: loop exit
PB: predicated region body
PF: predicated region fallthrough
CT: control target
= control target key end

     0   :  { %s495_s0 = inlined_call_operand.vmem [shape: f32[64,128], index: 0, kind: input, shape index: {}]   ;;  %s496_s1 = inlined_call_operand.vmem [shape: f32[64,128], index: 1, kind: input, shape index: {}]   ;;  %s497_s2 = inlined_call_operand.vmem [shape: f32[1,24,128], index: 2, kind: output, shape index: {}]  }
   0x1   :  { %v350_v0 = vld [vmem:[%s495_s0] sm:$0xff]  ;;  %v355_v1 = vld [vmem:[%s495_s0 + $0x8] sm:$0xff]  ;;  %v360_v2 = vld [vmem:[%s495_s0 + $0x10] sm:$0xff] }
   0x2   :  { %v365_v3 = vld [vmem:[%s495_s0 + $0x18] sm:$0xff]  ;;  %v98_v4 = vand.u32 2147483647, %v350_v0  ;;  %v371_v5 = vld [vmem:[%s495_s0 + $0x20] sm:$0xff]  ;;  %v376_v6 = vld [vmem:[%s495_s0 + $0x28] sm:$0xff]  ;;  %vm170_vm0 = vcmp.ge.f32.partialorder %v350_v0, 0.0 }
   0x3   :  { %v99_v7 = vand.u32 2147483647, %v355_v1  ;;  %v382_v8 = vld [vmem:[%s495_s0 + $0x30] sm:$0xff]  ;;  %v387_v9 = vld [vmem:[%s495_s0 + $0x38] sm:$0xff]  ;;  %v100_v10 = vand.u32 2147483647, %v360_v2 }
   0x4   :  { %v106_v11 = vsub.f32 0.0, %v98_v4  ;;  %v101_v12 = vand.u32 2147483647, %v365_v3  ;;  %v102_v14 = vand.u32 2147483647, %v371_v5  ;;  %v90_v47 = vld [vmem:[%s496_s1] sm:$0xff] }
   0x5   :  { %v107_v13 = vsub.f32 0.0, %v99_v7  ;;  %v103_v15 = vand.u32 2147483647, %v376_v6  ;;  %v108_v16 = vsub.f32 0.0, %v100_v10  ;;  %v104_v17 = vand.u32 2147483647, %v382_v8 }
   0x6   :  { %v105_v18 = vand.u32 2147483647, %v387_v9  ;;  %v109_v19 = vsub.f32 0.0, %v101_v12  ;;  %v110_v20 = vsub.f32 0.0, %v102_v14  ;;  %v114_v22 = vmul.f32 1.442695, %v106_v11 }
   0x7   :  { %v111_v21 = vsub.f32 0.0, %v103_v15  ;;  %v116_v23 = vmul.f32 1.442695, %v107_v13  ;;  %v112_v24 = vsub.f32 0.0, %v104_v17  ;;  %v118_v26 = vmul.f32 1.442695, %v108_v16 }
   0x8   :  { %v113_v25 = vsub.f32 0.0, %v105_v18  ;;  %v120_v27 = vmul.f32 1.442695, %v109_v19  ;;  %284 = vpow2.f32 %v114_v22  ;;  %v122_v28 = vmul.f32 1.442695, %v110_v20  ;;  %v91_v48 = vld [vmem:[%s496_s1 + $0x8] sm:$0xff] }
   0x9   :  { %286 = vpow2.f32 %v116_v23  ;;  %v124_v29 = vmul.f32 1.442695, %v111_v21  ;;  %v126_v30 = vmul.f32 1.442695, %v112_v24  ;;  %v92_v50 = vld [vmem:[%s496_s1 + $0x10] sm:$0xff]  ;;  %v93_v51 = vld [vmem:[%s496_s1 + $0x18] sm:$0xff]  ;;  %v410_v52 = vmul.f32 %v90_v47, %v350_v0 }
   0xa   :  { %288 = vpow2.f32 %v118_v26  ;;  %v128_v31 = vmul.f32 1.442695, %v113_v25  ;;  %vm171_vm1 = vcmp.ge.f32.partialorder %v355_v1, 0.0  ;;  %v413_v53 = vmul.f32 %v91_v48, %v355_v1  ;;  %v94_v22 = vld [vmem:[%s496_s1 + $0x20] sm:$0xff] }
   0xb   :  { %290 = vpow2.f32 %v120_v27  ;;  %vm172_vm2 = vcmp.ge.f32.partialorder %v360_v2, 0.0  ;;  %v417_v54 = vmul.f32 %v92_v50, %v360_v2  ;;  %v420_v55 = vmul.f32 %v93_v51, %v365_v3 }
   0xc   :  { %292 = vpow2.f32 %v122_v28  ;;  %vm173_vm3 = vcmp.ge.f32.partialorder %v365_v3, 0.0  ;;  %vm174_vm4 = vcmp.ge.f32.partialorder %v371_v5, 0.0  ;;  %vm175_vm5 = vcmp.ge.f32.partialorder %v376_v6, 0.0 }
   0xd   :  { %294 = vpow2.f32 %v124_v29  ;;  %vm176_vm6 = vcmp.ge.f32.partialorder %v382_v8, 0.0  ;;  %vm177_vm7 = vcmp.ge.f32.partialorder %v387_v9, 0.0  ;;  %v138_v58 = vmax.f32 %v350_v0, 0.0 }
   0xe   :  { %296 = vpow2.f32 %v126_v30  ;;  %v139_v59 = vmax.f32 %v355_v1, 0.0  ;;  %v140_v62 = vmax.f32 %v360_v2, 0.0  ;;  %v141_v63 = vmax.f32 %v365_v3, 0.0 }
   0xf   :  { %298 = vpow2.f32 %v128_v31  ;;  %v142_v11 = vmax.f32 %v371_v5, 0.0  ;;  %v143_v15 = vmax.f32 %v376_v6, 0.0 }
  0x15   :  { %v285_v32 = vpop.eup %284 }
  0x16   :  { %v287_v33 = vpop.eup %286  ;;  %v130_v34 = vadd.f32 1.0, %v285_v32  ;;  %v178_v56 = vsel %vm170_vm0, 1.0, %v285_v32 }
  0x17   :  { %v289_v35 = vpop.eup %288  ;;  %v131_v36 = vadd.f32 1.0, %v287_v33  ;;  %v179_v57 = vsel %vm171_vm1, 1.0, %v287_v33 }
  0x18   :  { %v291_v37 = vpop.eup %290  ;;  %v132_v38 = vadd.f32 1.0, %v289_v35  ;;  %300 = vrcp.f32 %v130_v34  ;;  %v180_v61 = vsel %vm172_vm2, 1.0, %v289_v35 }
  0x19   :  { %v293_v39 = vpop.eup %292  ;;  %v133_v40 = vadd.f32 1.0, %v291_v37  ;;  %302 = vrcp.f32 %v131_v36  ;;  %v181_v7 = vsel %vm173_vm3, 1.0, %v291_v37 }
  0x1a   :  { %v295_v41 = vpop.eup %294  ;;  %v134_v42 = vadd.f32 1.0, %v293_v39  ;;  %304 = vrcp.f32 %v132_v38  ;;  %v182_v13 = vsel %vm174_vm4, 1.0, %v293_v39 }
  0x1b   :  { %v297_v43 = vpop.eup %296  ;;  %v135_v44 = vadd.f32 1.0, %v295_v41  ;;  %306 = vrcp.f32 %v133_v40  ;;  %v183_v17 = vsel %vm175_vm5, 1.0, %v295_v41  ;;  %v454_v41 = vmul.f32 %v94_v22, %v371_v5 }
  0x1c   :  { %v299_v45 = vpop.eup %298  ;;  %v136_v46 = vadd.f32 1.0, %v297_v43  ;;  %308 = vrcp.f32 %v134_v42  ;;  %v184_v23 = vsel %vm176_vm6, 1.0, %v297_v43  ;;  %v95_v43 = vld [vmem:[%s496_s1 + $0x28] sm:$0xff] }
  0x1d   :  { %v137_v49 = vadd.f32 1.0, %v299_v45  ;;  %310 = vrcp.f32 %v135_v44  ;;  %v185_v28 = vsel %vm177_vm7, 1.0, %v299_v45 }
  0x1e   :  { %312 = vrcp.f32 %v136_v46 }
  0x1f   :  { %314 = vrcp.f32 %v137_v49 }
  0x20   :  { %316 = vlog2.f32 %v130_v34 }
  0x21   :  { %318 = vlog2.f32 %v131_v36  ;;  %v144_v36 = vmax.f32 %v382_v8, 0.0 }
  0x22   :  { %320 = vlog2.f32 %v132_v38 }
  0x23   :  { %322 = vlog2.f32 %v133_v40 }
  0x24   :  { %324 = vlog2.f32 %v134_v42 }
  0x25   :  { %v301_v60 = vpop.eup %300  ;;  %326 = vlog2.f32 %v135_v44 }
  0x26   :  { %v303_v4 = vpop.eup %302  ;;  %v194_v10 = vmul.f32 %v301_v60, %v178_v56  ;;  %328 = vlog2.f32 %v136_v46 }
  0x27   :  { %v305_v12 = vpop.eup %304  ;;  %v195_v14 = vmul.f32 %v303_v4, %v179_v57  ;;  %330 = vlog2.f32 %v137_v49  ;;  %v96_v49 = vld [vmem:[%s496_s1 + $0x30] sm:$0xff] }
  0x28   :  { %v307_v16 = vpop.eup %306  ;;  %v196_v18 = vmul.f32 %v305_v12, %v180_v61  ;;  %v218_v19 = vmul.f32 %v194_v10, %v90_v47  ;;  %v234_v20 = vadd.f32 %v194_v10, %v90_v47  ;;  %v97_v61 = vld [vmem:[%s496_s1 + $0x38] sm:$0xff] }
  0x29   :  { %v309_v21 = vpop.eup %308  ;;  %v197_v24 = vmul.f32 %v307_v16, %v181_v7  ;;  %v219_v25 = vmul.f32 %v195_v14, %v91_v48  ;;  %v235_v26 = vadd.f32 %v195_v14, %v91_v48 }
  0x2a   :  { %v311_v27 = vpop.eup %310  ;;  %v198_v29 = vmul.f32 %v309_v21, %v182_v13  ;;  %v220_v30 = vmul.f32 %v196_v18, %v92_v50  ;;  %v236_v31 = vadd.f32 %v196_v18, %v92_v50 }
  0x2b   :  { %v313_v32 = vpop.eup %312  ;;  %v199_v33 = vmul.f32 %v311_v27, %v183_v17  ;;  %v221_v34 = vmul.f32 %v197_v24, %v93_v51  ;;  %v226_v35 = vadd.f32 %v219_v25, %v218_v19  ;;  %v237_v39 = vadd.f32 %v197_v24, %v93_v51 }
  0x2c   :  { %v315_v37 = vpop.eup %314  ;;  %v200_v38 = vmul.f32 %v313_v32, %v184_v23  ;;  %v242_v40 = vadd.f32 %v235_v26, %v234_v20  ;;  %v222_v45 = vmul.f32 %v198_v29, %v94_v22  ;;  %v238_v47 = vadd.f32 %v198_v29, %v94_v22 }
  0x2d   :  { %v317_v42 = vpop.eup %316  ;;  %v201_v44 = vmul.f32 %v315_v37, %v185_v28  ;;  %v227_v46 = vadd.f32 %v226_v35, %v220_v30  ;;  %v223_v50 = vmul.f32 %v199_v33, %v95_v43  ;;  %v239_v51 = vadd.f32 %v199_v33, %v95_v43 }
  0x2e   :  { %v319_v48 = vpop.eup %318  ;;  %v243_v56 = vadd.f32 %v242_v40, %v236_v31  ;;  %v147_v57 = vmul.f32 0.6931472, %v317_v42  ;;  %v224_v4 = vmul.f32 %v200_v38, %v96_v49  ;;  %v240_v10 = vadd.f32 %v200_v38, %v96_v49 }
  0x2f   :  { %v321_v60 = vpop.eup %320  ;;  %v228_v7 = vadd.f32 %v227_v46, %v221_v34  ;;  %v149_v12 = vmul.f32 0.6931472, %v319_v48  ;;  %v225_v14 = vmul.f32 %v201_v44, %v97_v61  ;;  %v241_v21 = vadd.f32 %v201_v44, %v97_v61 }
  0x30   :  { %v323_v13 = vpop.eup %322  ;;  %v244_v16 = vadd.f32 %v243_v56, %v237_v39  ;;  %v151_v17 = vmul.f32 0.6931472, %v321_v60  ;;  %v162_v18 = vadd.f32 %v147_v57, %v138_v58  ;;  %v207_v35 = vmul.f32 %v95_v43, %v376_v6 }
  0x31   :  { %v325_v19 = vpop.eup %324  ;;  %v229_v20 = vadd.f32 %v228_v7, %v222_v45  ;;  %v153_v22 = vmul.f32 0.6931472, %v323_v13  ;;  %v163_v23 = vadd.f32 %v149_v12, %v139_v59  ;;  %v208_v39 = vmul.f32 %v96_v49, %v382_v8 }
  0x32   :  { %v327_v24 = vpop.eup %326  ;;  %v245_v25 = vadd.f32 %v244_v16, %v238_v47  ;;  %v155_v26 = vmul.f32 0.6931472, %v325_v19  ;;  %v164_v27 = vadd.f32 %v151_v17, %v140_v62  ;;  %v210_v28 = vsub.f32 %v162_v18, %v410_v52 }
  0x33   :  { %v329_v29 = vpop.eup %328  ;;  %v230_v30 = vadd.f32 %v229_v20, %v223_v50  ;;  %v157_v31 = vmul.f32 0.6931472, %v327_v24  ;;  %v165_v0 = vadd.f32 %v153_v22, %v141_v63  ;;  %v211_v58 = vsub.f32 %v163_v23, %v413_v53 }
  0x34   :  { %v331_v32 = vpop.eup %330  ;;  %v246_v33 = vadd.f32 %v245_v25, %v239_v51  ;;  %v159_v1 = vmul.f32 0.6931472, %v329_v29  ;;  %v166_v59 = vadd.f32 %v155_v26, %v142_v11  ;;  %v212_v34 = vsub.f32 %v164_v27, %v417_v54 }
  0x35   :  { %v231_v2 = vadd.f32 %v230_v30, %v224_v4  ;;  %v145_v62 = vmax.f32 %v387_v9, 0.0  ;;  %v161_v52 = vmul.f32 0.6931472, %v331_v32  ;;  %v167_v3 = vadd.f32 %v157_v31, %v143_v15 }
  0x36   :  { %v247_v37 = vadd.f32 %v246_v33, %v240_v10  ;;  %v213_v53 = vsub.f32 %v165_v0, %v420_v55  ;;  %v250_v63 = vadd.f32 %v211_v58, %v210_v28  ;;  %v168_v11 = vadd.f32 %v159_v1, %v144_v36 }
  0x37   :  { %v232_v38 = vadd.f32 %v231_v2, %v225_v14  ;;  %v214_v54 = vsub.f32 %v166_v59, %v454_v41  ;;  %v209_v42 = vmul.f32 %v97_v61, %v387_v9  ;;  %v169_v44 = vadd.f32 %v161_v52, %v145_v62 }
  0x38   :  { %v248_v5 = vadd.f32 %v247_v37, %v241_v21  ;;  %v251_v40 = vadd.f32 %v250_v63, %v212_v34  ;;  %v215_v45 = vsub.f32 %v167_v3, %v207_v35  ;;  %v216_v6 = vsub.f32 %v168_v11, %v208_v39 }
  0x39   :  { %260 = vst [vmem:[%s497_s2] sm:$0xff] %v232_v38  ;;  %v217_v55 = vsub.f32 %v169_v44, %v209_v42 }
  0x3a   :  { %v252_v43 = vadd.f32 %v251_v40, %v213_v53  ;;  %263 = vst [vmem:[%s497_s2 + $0x8] sm:$0xff] %v248_v5 }
  0x3c   :  { %v253_v8 = vadd.f32 %v252_v43, %v214_v54 }
  0x3e   :  { %v254_v15 = vadd.f32 %v253_v8, %v215_v45 }
  0x40   :  { %v255_v36 = vadd.f32 %v254_v15, %v216_v6 }
  0x42   :  { %v256_v41 = vadd.f32 %v255_v36, %v217_v55 }
  0x44   :  { %266 = vst [vmem:[%s497_s2 + $0x10] sm:$0xff] %v256_v41 }

</bundles_post_ra>
